<compile_context>
chip_gen: v7x
topology: tpu7x:2x2x1
jax: 0.10.0
libtpu: 0.0.40
codegen_flags: <defaults>
</compile_context>

<pallas_src>
import jax
import jax.numpy as jnp
from jax import lax
from jax.experimental import pallas as pl
from jax.experimental.pallas import tpu as pltpu


# ---------------------------------------------------------------------------
# Fused kernel
# ---------------------------------------------------------------------------

def _make_fused_kernel(K, P, TH, W, Cin, C, WPAD):
    """Fused pointwise(1x1) -> depthwise(KxK, stride 1, 'same').

    Grid step (n, t) produces output rows [t*TH, (t+1)*TH) of image n.
    """
    R = TH + 2 * P  # centre rows + top/bottom halo rows

    def kernel(xt_ref, xc_ref, xb_ref, wpw_ref, bpw_ref, wdw_ref, bdw_ref,
               o_ref, ypad_ref):
        # xt_ref : (1, P,  W, Cin)  P rows just above the tile (clamped idx)
        # xc_ref : (1, TH, W, Cin)  centre rows of the tile
        # xb_ref : (1, P,  W, Cin)  P rows just below the tile (clamped idx)
        # wpw_ref: (Cin, C)   bpw_ref: (1, C)
        # wdw_ref: (K*K, C)   bdw_ref: (1, C)
        # o_ref  : (1, TH, W, C)
        # ypad_ref: (R, W + 2*WPAD, C) f32 VMEM scratch (pointwise activation,
        #           zero-padded only where the depthwise taps read padding)
        t = pl.program_id(1)
        nt = pl.num_programs(1)

        # ---------------- pointwise stage: ONE MXU matmul ----------------
        x_ext = jnp.concatenate([xt_ref[0], xc_ref[0], xb_ref[0]], axis=0)
        wpw = wpw_ref[...]
        x2 = x_ext.reshape(R * W, Cin).astype(wpw.dtype)
        y2 = jnp.dot(x2, wpw, preferred_element_type=jnp.float32) + bpw_ref[...]
        y_ext = y2.reshape(R, W, C)

        # Stage into the scratch at an 8-aligned column offset (unmasked vst).
        ypad_ref[:, WPAD:WPAD + W, :] = y_ext

        # Zero ONLY the P-column strips the kw taps read (no full-scratch zero;
        # the centre columns were just fully overwritten).
        ypad_ref[:, WPAD - P:WPAD, :] = jnp.zeros((R, P, C), jnp.float32)
        ypad_ref[:, WPAD + W:WPAD + W + P, :] = jnp.zeros((R, P, C), jnp.float32)

        # At the image border the clamped halo rows must be conv zero-padding.
        # Both grid axes are "parallel": every step fully (re)writes what it
        # reads, so the scratch carries no cross-iteration state (megacore OK).
        @pl.when(t == 0)
        def _():
            ypad_ref[0:P, WPAD:WPAD + W, :] = jnp.zeros((P, W, C), jnp.float32)

        @pl.when(t == nt - 1)
        def _():
            ypad_ref[P + TH:R, WPAD:WPAD + W, :] = jnp.zeros((P, W, C),
                                                             jnp.float32)

        # ---------------- depthwise stage: K*K taps -----------------------
        wdw = wdw_ref[...]  # (K*K, C)
        # Accumulator initialised with the broadcast bias (hoisted, single op).
        acc = jnp.broadcast_to(bdw_ref[0, :], (TH, W, C)).astype(jnp.float32)
        for kh in range(K):
            for kw in range(K):
                patch = ypad_ref[kh:kh + TH,
                                 WPAD - P + kw:WPAD - P + kw + W, :]
                acc = acc + patch * wdw[kh * K + kw, :]
        o_ref[...] = acc[None].astype(o_ref.dtype)

    return kernel


# ---------------------------------------------------------------------------
# Tile-height selection from an explicit VMEM budget
# ---------------------------------------------------------------------------

def _pick_tile_h(H, W, Cin, C, K, P, wpad, budget_bytes=12 * 1024 * 1024):
    """Largest divisor of H (multiple of P) whose per-step working set fits."""

    def est(th):
        r = th + 2 * P
        return (2 * th * W * Cin * 4          # centre input, double-buffered
                + 2 * 2 * P * W * Cin * 4     # two halo views, double-buffered
                + 2 * th * W * C * 4          # output block, double-buffered
                + r * (W + 2 * wpad) * C * 4  # f32 activation scratch
                + (Cin * C + K * K * C + 2 * C) * 4)  # weights

    best = None
    for th in range(P, H + 1, P):
        if H % th != 0:
            continue
        if best is None or est(th) <= budget_bytes:
            best = th
    return best if best is not None else H


# ---------------------------------------------------------------------------
# Wrappers
# ---------------------------------------------------------------------------

def depthwise_separable_forward_nhwc(x_nhwc, params, *, kernel_size, stride=1,
                                     padding=1, tile_h=None, use_bf16=False):
    """NHWC performance path (no layout transposes around the kernel).

    params are PyTorch-shaped:
        pw_w: (Cout, Cin, 1, 1), pw_b: (Cout,)
        dw_w: (Cin,  1, K, K),   dw_b: (Cin,)
    """
    assert stride == 1
    K, P = kernel_size, padding
    assert P >= 1 and 2 * P == K - 1, "only the 'same' geometry is row-tiled"

    pw_w, pw_b = params["pw_w"], params["pw_b"]
    dw_w, dw_b = params["dw_w"], params["dw_b"]
    Cout, Cin = pw_w.shape[0], pw_w.shape[1]
    C = dw_w.shape[0]
    # forward() only type-checks in PyTorch when out_channels == in_channels.
    assert Cout == C, "pointwise output channels must equal depthwise channels"

    N, H, W, _ = x_nhwc.shape
    assert H % P == 0, "row tiling requires H to be a multiple of the padding"

    # 8-aligned sublane offset of the centre columns inside the scratch.
    WPAD = ((max(P, 8) + 7) // 8) * 8

    # Weight layouts: pointwise (Cout,Cin,1,1) -> (Cin,Cout); depthwise
    # (C,1,K,K) -> (K*K, C) so every tap is a lane-aligned row.
    mm_dtype = jnp.bfloat16 if use_bf16 else jnp.float32
    w_pw = jnp.transpose(pw_w.reshape(Cout, Cin), (1, 0)).astype(mm_dtype)
    b_pw = pw_b.reshape(1, Cout).astype(jnp.float32)
    w_dw = jnp.transpose(dw_w.reshape(C, K * K), (1, 0)).astype(jnp.float32)
    b_dw = dw_b.reshape(1, C).astype(jnp.float32)

    if tile_h is None:
        TH = _pick_tile_h(H, W, Cin, C, K, P, WPAD)
    else:
        TH = tile_h
        assert H % TH == 0 and TH % P == 0, "tile_h must divide H, be %P==0"
    nt = H // TH
    hb = TH // P        # P-row blocks per tile
    n_pblk = H // P     # P-row blocks in the image

    x_nhwc = x_nhwc.astype(jnp.float32)
    kernel = _make_fused_kernel(K, P, TH, W, Cin, C, WPAD)

    def centre_map(n, t):
        return (n, t, 0, 0)

    def top_map(n, t):      # P rows just above the tile, clamped at row 0
        return (n, jnp.maximum(t * hb - 1, 0), 0, 0)

    def bot_map(n, t):      # P rows just below the tile, clamped at last block
        return (n, jnp.minimum((t + 1) * hb, n_pblk - 1), 0, 0)

    return pl.pallas_call(
        kernel,
        out_shape=jax.ShapeDtypeStruct((N, H, W, C), jnp.float32),
        grid=(N, nt),
        in_specs=[
            pl.BlockSpec((1, P, W, Cin), top_map),
            pl.BlockSpec((1, TH, W, Cin), centre_map),
            pl.BlockSpec((1, P, W, Cin), bot_map),
            pl.BlockSpec((Cin, C), lambda n, t: (0, 0)),
            pl.BlockSpec((1, C), lambda n, t: (0, 0)),
            pl.BlockSpec((K * K, C), lambda n, t: (0, 0)),
            pl.BlockSpec((1, C), lambda n, t: (0, 0)),
        ],
        out_specs=pl.BlockSpec((1, TH, W, C), lambda n, t: (n, t, 0, 0)),
        scratch_shapes=[
            pltpu.VMEM((TH + 2 * P, W + 2 * WPAD, C), jnp.float32)],
        compiler_params=pltpu.CompilerParams(
            dimension_semantics=("parallel", "parallel"),
            vmem_limit_bytes=32 * 1024 * 1024),
    )(x_nhwc, x_nhwc, x_nhwc, w_pw, b_pw, w_dw, b_dw)


def depthwise_separable_forward(x_nchw, params, *, kernel_size, stride=1,
                                padding=1, tile_h=None, use_bf16=False):
    """NCHW wrapper for PyTorch-layout parity.

    The transposes here are only for parity with nn.Conv2d's NCHW convention;
    performance-sensitive callers should keep activations NHWC and call
    depthwise_separable_forward_nhwc directly (no extra HBM round trips).
    """
    x_nhwc = jnp.transpose(x_nchw, (0, 2, 3, 1))
    out_nhwc = depthwise_separable_forward_nhwc(
        x_nhwc, params, kernel_size=kernel_size, stride=stride,
        padding=padding, tile_h=tile_h, use_bf16=use_bf16)
    return jnp.transpose(out_nhwc, (0, 3, 1, 2))


# ---------------------------------------------------------------------------
# Pure-JAX reference (mirrors PyTorch nn.Conv2d semantics, NCHW)
# ---------------------------------------------------------------------------

def _reference_forward(x_nchw, params, *, kernel_size, stride=1, padding=1):
    pw_w, pw_b = params["pw_w"], params["pw_b"]
    dw_w, dw_b = params["dw_w"], params["dw_b"]
    dn = ("NCHW", "OIHW", "NCHW")
    y = lax.conv_general_dilated(
        x_nchw, pw_w, window_strides=(stride, stride), padding="VALID",
        dimension_numbers=dn) + pw_b[None, :, None, None]
    C = dw_w.shape[0]
    z = lax.conv_general_dilated(
        y, dw_w, window_strides=(stride, stride),
        padding=[(padding, padding), (padding, padding)],
        dimension_numbers=dn, feature_group_count=C) + dw_b[None, :, None, None]
    return z


# ---------------------------------------------------------------------------
# Main
# ---------------------------------------------------------------------------

if __name__ == "__main__":
    # Small shapes consistent with the module.  out_channels == in_channels so
    # the (pointwise -> depthwise) composition in forward() is well-formed.
    N, Cin, H, W = 2, 8, 16, 16
    Cout = Cin
    K, stride, padding = 3, 1, 1

    key = jax.random.PRNGKey(0)
    k1, k2, k3, k4, k5 = jax.random.split(key, 5)

    x = jax.random.normal(k1, (N, Cin, H, W), dtype=jnp.float32)
    params = {
        "pw_w": jax.random.normal(k2, (Cout, Cin, 1, 1), dtype=jnp.float32) * 0.1,
        "pw_b": jax.random.normal(k3, (Cout,), dtype=jnp.float32) * 0.1,
        "dw_w": jax.random.normal(k4, (Cin, 1, K, K), dtype=jnp.float32) * 0.1,
        "dw_b": jax.random.normal(k5, (Cin,), dtype=jnp.float32) * 0.1,
    }

    # tile_h=8 -> grid (2, 2): exercises the cross-tile halo path and gives the
    # v7x megacore two parallel grid steps per axis at toy size.
    out = depthwise_separable_forward(
        x, params, kernel_size=K, stride=stride, padding=padding, tile_h=8)
    out = jax.block_until_ready(out)

    ref = _reference_forward(
        x, params, kernel_size=K, stride=stride, padding=padding)
    ref = jax.block_until_ready(ref)

    assert out.shape == ref.shape == (N, Cin, H, W), (out.shape, ref.shape)
    max_err = float(jnp.max(jnp.abs(out - ref)))
    assert jnp.allclose(out, ref, atol=1e-4, rtol=1e-4), max_err

    print("KERNEL_OK")
</pallas_src>

<mosaic_0001>
module attributes {stable_mosaic.version = 11 : i64} {
  func.func @kernel(%arg0: i32, %arg1: i32, %arg2: memref<1x1x16x8xf32, #tpu.memory_space<vmem>>, %arg3: memref<1x8x16x8xf32, #tpu.memory_space<vmem>>, %arg4: memref<1x1x16x8xf32, #tpu.memory_space<vmem>>, %arg5: memref<8x8xf32, #tpu.memory_space<vmem>>, %arg6: memref<1x8xf32, #tpu.memory_space<vmem>>, %arg7: memref<9x8xf32, #tpu.memory_space<vmem>>, %arg8: memref<1x8xf32, #tpu.memory_space<vmem>>, %arg9: memref<1x8x16x8xf32, #tpu.memory_space<vmem>>, %arg10: memref<10x32x8xf32, #tpu.memory_space<vmem>>) attributes {dimension_semantics = [#tpu.dimension_semantics<parallel>, #tpu.dimension_semantics<parallel>], iteration_bounds = array<i64: 2, 2>, scalar_prefetch = 0 : i64, scratch_operands = 1 : i64, tpu.core_type = #tpu.core_type<tc>, window_params = [{transform_indices = @transform_0, window_bounds = array<i64: 1, 1, 16, 8>}, {transform_indices = @transform_1, window_bounds = array<i64: 1, 8, 16, 8>}, {transform_indices = @transform_2, window_bounds = array<i64: 1, 1, 16, 8>}, {pipeline_mode = #tpu.pipeline_mode<synchronous>, transform_indices = @transform_3, window_bounds = array<i64: 8, 8>}, {pipeline_mode = #tpu.pipeline_mode<synchronous>, transform_indices = @transform_4, window_bounds = array<i64: 1, 8>}, {pipeline_mode = #tpu.pipeline_mode<synchronous>, transform_indices = @transform_5, window_bounds = array<i64: 9, 8>}, {pipeline_mode = #tpu.pipeline_mode<synchronous>, transform_indices = @transform_6, window_bounds = array<i64: 1, 8>}, {transform_indices = @transform_7, window_bounds = array<i64: 1, 8, 16, 8>}]} {
    %c0 = arith.constant 0 : index
    %c0_0 = arith.constant 0 : index
    %c0_1 = arith.constant 0 : index
    %c0_2 = arith.constant 0 : index
    %0 = vector.load %arg2[%c0, %c0_0, %c0_1, %c0_2] : memref<1x1x16x8xf32, #tpu.memory_space<vmem>>, vector<1x1x16x8xf32>
    %1 = vector.shape_cast %0 : vector<1x1x16x8xf32> to vector<1x16x8xf32>
    %c0_3 = arith.constant 0 : index
    %c0_4 = arith.constant 0 : index
    %c0_5 = arith.constant 0 : index
    %c0_6 = arith.constant 0 : index
    %2 = vector.load %arg3[%c0_3, %c0_4, %c0_5, %c0_6] : memref<1x8x16x8xf32, #tpu.memory_space<vmem>>, vector<1x8x16x8xf32>
    %3 = vector.shape_cast %2 : vector<1x8x16x8xf32> to vector<8x16x8xf32>
    %c0_7 = arith.constant 0 : index
    %c0_8 = arith.constant 0 : index
    %c0_9 = arith.constant 0 : index
    %c0_10 = arith.constant 0 : index
    %4 = vector.load %arg4[%c0_7, %c0_8, %c0_9, %c0_10] : memref<1x1x16x8xf32, #tpu.memory_space<vmem>>, vector<1x1x16x8xf32>
    %5 = vector.shape_cast %4 : vector<1x1x16x8xf32> to vector<1x16x8xf32>
    %6 = tpu.concatenate %1, %3, %5 in 0 : vector<1x16x8xf32>, vector<8x16x8xf32>, vector<1x16x8xf32> -> vector<10x16x8xf32>
    %c0_11 = arith.constant 0 : index
    %c0_12 = arith.constant 0 : index
    %7 = vector.load %arg5[%c0_11, %c0_12] : memref<8x8xf32, #tpu.memory_space<vmem>>, vector<8x8xf32>
    %8 = vector.shape_cast %6 : vector<10x16x8xf32> to vector<160x8xf32>
    %cst = arith.constant dense<0.000000e+00> : vector<160x8xf32>
    %9 = tpu.matmul %8, %7, %cst {dimension_numbers = #tpu.dot_dimension_numbers<[1], [0], [0], [1], [0, 0, 1, 1], [], []>} : vector<160x8xf32>, vector<8x8xf32>, vector<160x8xf32> -> vector<160x8xf32>
    %c0_13 = arith.constant 0 : index
    %c0_14 = arith.constant 0 : index
    %10 = vector.load %arg6[%c0_13, %c0_14] : memref<1x8xf32, #tpu.memory_space<vmem>>, vector<1x8xf32>
    %11 = vector.broadcast %10 : vector<1x8xf32> to vector<160x8xf32>
    %12 = arith.addf %9, %11 : vector<160x8xf32>
    %13 = vector.shape_cast %12 : vector<160x8xf32> to vector<10x16x8xf32>
    %c0_15 = arith.constant 0 : index
    %c8 = arith.constant 8 : index
    %c0_16 = arith.constant 0 : index
    %14 = vector.load %arg10[%c0_15, %c8, %c0_16] : memref<10x32x8xf32, #tpu.memory_space<vmem>>, vector<10x16x8xf32>
    tpu.vector_store %arg10[%c0_15, %c8, %c0_16], %13 {strides = array<i32>} : memref<10x32x8xf32, #tpu.memory_space<vmem>>, vector<10x16x8xf32>,
    %cst_17 = arith.constant 0.000000e+00 : f32
    %15 = vector.broadcast %cst_17 : f32 to vector<10x1x8xf32>
    %c0_18 = arith.constant 0 : index
    %c7 = arith.constant 7 : index
    %c0_19 = arith.constant 0 : index
    %16 = vector.load %arg10[%c0_18, %c7, %c0_19] : memref<10x32x8xf32, #tpu.memory_space<vmem>>, vector<10x1x8xf32>
    tpu.vector_store %arg10[%c0_18, %c7, %c0_19], %15 {strides = array<i32>} : memref<10x32x8xf32, #tpu.memory_space<vmem>>, vector<10x1x8xf32>,
    %cst_20 = arith.constant 0.000000e+00 : f32
    %17 = vector.broadcast %cst_20 : f32 to vector<10x1x8xf32>
    %c0_21 = arith.constant 0 : index
    %c24 = arith.constant 24 : index
    %c0_22 = arith.constant 0 : index
    %18 = vector.load %arg10[%c0_21, %c24, %c0_22] : memref<10x32x8xf32, #tpu.memory_space<vmem>>, vector<10x1x8xf32>
    tpu.vector_store %arg10[%c0_21, %c24, %c0_22], %17 {strides = array<i32>} : memref<10x32x8xf32, #tpu.memory_space<vmem>>, vector<10x1x8xf32>,
    %c0_i32 = arith.constant 0 : i32
    %19 = arith.cmpi eq, %arg1, %c0_i32 : i32
    %20 = arith.extui %19 : i1 to i32
    %c0_i32_23 = arith.constant 0 : i32
    %21 = arith.cmpi ne, %20, %c0_i32_23 : i32
    scf.if %21 {
      %cst_57 = arith.constant 0.000000e+00 : f32
      %95 = vector.broadcast %cst_57 : f32 to vector<1x16x8xf32>
      %c0_58 = arith.constant 0 : index
      %c8_59 = arith.constant 8 : index
      %c0_60 = arith.constant 0 : index
      %96 = vector.load %arg10[%c0_58, %c8_59, %c0_60] : memref<10x32x8xf32, #tpu.memory_space<vmem>>, vector<1x16x8xf32>
      tpu.vector_store %arg10[%c0_58, %c8_59, %c0_60], %95 {strides = array<i32>} : memref<10x32x8xf32, #tpu.memory_space<vmem>>, vector<1x16x8xf32>,
    } else {
    }
    %c1_i32 = arith.constant 1 : i32
    %22 = arith.cmpi eq, %arg1, %c1_i32 : i32
    %23 = arith.extui %22 : i1 to i32
    %c0_i32_24 = arith.constant 0 : i32
    %24 = arith.cmpi ne, %23, %c0_i32_24 : i32
    scf.if %24 {
      %cst_57 = arith.constant 0.000000e+00 : f32
      %95 = vector.broadcast %cst_57 : f32 to vector<1x16x8xf32>
      %c9_58 = arith.constant 9 : index
      %c8_59 = arith.constant 8 : index
      %c0_60 = arith.constant 0 : index
      %96 = vector.load %arg10[%c9_58, %c8_59, %c0_60] : memref<10x32x8xf32, #tpu.memory_space<vmem>>, vector<1x16x8xf32>
      tpu.vector_store %arg10[%c9_58, %c8_59, %c0_60], %95 {strides = array<i32>} : memref<10x32x8xf32, #tpu.memory_space<vmem>>, vector<1x16x8xf32>,
    } else {
    }
    %c0_25 = arith.constant 0 : index
    %c0_26 = arith.constant 0 : index
    %25 = vector.load %arg7[%c0_25, %c0_26] : memref<9x8xf32, #tpu.memory_space<vmem>>, vector<9x8xf32>
    %c0_27 = arith.constant 0 : index
    %c0_28 = arith.constant 0 : index
    %26 = vector.load %arg8[%c0_27, %c0_28] : memref<1x8xf32, #tpu.memory_space<vmem>>, vector<1x8xf32>
    %27 = vector.shape_cast %26 : vector<1x8xf32> to vector<8xf32>
    %28 = vector.shape_cast %27 : vector<8xf32> to vector<1x1x8xf32>
    %29 = vector.broadcast %28 : vector<1x1x8xf32> to vector<8x16x8xf32>
    %c0_29 = arith.constant 0 : index
    %c7_30 = arith.constant 7 : index
    %c0_31 = arith.constant 0 : index
    %30 = vector.load %arg10[%c0_29, %c7_30, %c0_31] : memref<10x32x8xf32, #tpu.memory_space<vmem>>, vector<8x16x8xf32>
    %31 = vector.extract_strided_slice %25 {offsets = [0, 0], sizes = [1, 8], strides = [1, 1]} : vector<9x8xf32> to vector<1x8xf32>
    %32 = vector.shape_cast %31 : vector<1x8xf32> to vector<8xf32>
    %33 = vector.shape_cast %32 : vector<8xf32> to vector<1x1x8xf32>
    %34 = vector.broadcast %33 : vector<1x1x8xf32> to vector<8x16x8xf32>
    %35 = arith.mulf %30, %34 : vector<8x16x8xf32>
    %36 = arith.addf %29, %35 : vector<8x16x8xf32>
    %c0_32 = arith.constant 0 : index
    %c8_33 = arith.constant 8 : index
    %c0_34 = arith.constant 0 : index
    %37 = vector.load %arg10[%c0_32, %c8_33, %c0_34] : memref<10x32x8xf32, #tpu.memory_space<vmem>>, vector<8x16x8xf32>
    %38 = vector.extract_strided_slice %25 {offsets = [1, 0], sizes = [1, 8], strides = [1, 1]} : vector<9x8xf32> to vector<1x8xf32>
    %39 = vector.shape_cast %38 : vector<1x8xf32> to vector<8xf32>
    %40 = vector.shape_cast %39 : vector<8xf32> to vector<1x1x8xf32>
    %41 = vector.broadcast %40 : vector<1x1x8xf32> to vector<8x16x8xf32>
    %42 = arith.mulf %37, %41 : vector<8x16x8xf32>
    %43 = arith.addf %36, %42 : vector<8x16x8xf32>
    %c0_35 = arith.constant 0 : index
    %c9 = arith.constant 9 : index
    %c0_36 = arith.constant 0 : index
    %44 = vector.load %arg10[%c0_35, %c9, %c0_36] : memref<10x32x8xf32, #tpu.memory_space<vmem>>, vector<8x16x8xf32>
    %45 = vector.extract_strided_slice %25 {offsets = [2, 0], sizes = [1, 8], strides = [1, 1]} : vector<9x8xf32> to vector<1x8xf32>
    %46 = vector.shape_cast %45 : vector<1x8xf32> to vector<8xf32>
    %47 = vector.shape_cast %46 : vector<8xf32> to vector<1x1x8xf32>
    %48 = vector.broadcast %47 : vector<1x1x8xf32> to vector<8x16x8xf32>
    %49 = arith.mulf %44, %48 : vector<8x16x8xf32>
    %50 = arith.addf %43, %49 : vector<8x16x8xf32>
    %c1 = arith.constant 1 : index
    %c7_37 = arith.constant 7 : index
    %c0_38 = arith.constant 0 : index
    %51 = vector.load %arg10[%c1, %c7_37, %c0_38] : memref<10x32x8xf32, #tpu.memory_space<vmem>>, vector<8x16x8xf32>
    %52 = vector.extract_strided_slice %25 {offsets = [3, 0], sizes = [1, 8], strides = [1, 1]} : vector<9x8xf32> to vector<1x8xf32>
    %53 = vector.shape_cast %52 : vector<1x8xf32> to vector<8xf32>
    %54 = vector.shape_cast %53 : vector<8xf32> to vector<1x1x8xf32>
    %55 = vector.broadcast %54 : vector<1x1x8xf32> to vector<8x16x8xf32>
    %56 = arith.mulf %51, %55 : vector<8x16x8xf32>
    %57 = arith.addf %50, %56 : vector<8x16x8xf32>
    %c1_39 = arith.constant 1 : index
    %c8_40 = arith.constant 8 : index
    %c0_41 = arith.constant 0 : index
    %58 = vector.load %arg10[%c1_39, %c8_40, %c0_41] : memref<10x32x8xf32, #tpu.memory_space<vmem>>, vector<8x16x8xf32>
    %59 = vector.extract_strided_slice %25 {offsets = [4, 0], sizes = [1, 8], strides = [1, 1]} : vector<9x8xf32> to vector<1x8xf32>
    %60 = vector.shape_cast %59 : vector<1x8xf32> to vector<8xf32>
    %61 = vector.shape_cast %60 : vector<8xf32> to vector<1x1x8xf32>
    %62 = vector.broadcast %61 : vector<1x1x8xf32> to vector<8x16x8xf32>
    %63 = arith.mulf %58, %62 : vector<8x16x8xf32>
    %64 = arith.addf %57, %63 : vector<8x16x8xf32>
    %c1_42 = arith.constant 1 : index
    %c9_43 = arith.constant 9 : index
    %c0_44 = arith.constant 0 : index
    %65 = vector.load %arg10[%c1_42, %c9_43, %c0_44] : memref<10x32x8xf32, #tpu.memory_space<vmem>>, vector<8x16x8xf32>
    %66 = vector.extract_strided_slice %25 {offsets = [5, 0], sizes = [1, 8], strides = [1, 1]} : vector<9x8xf32> to vector<1x8xf32>
    %67 = vector.shape_cast %66 : vector<1x8xf32> to vector<8xf32>
    %68 = vector.shape_cast %67 : vector<8xf32> to vector<1x1x8xf32>
    %69 = vector.broadcast %68 : vector<1x1x8xf32> to vector<8x16x8xf32>
    %70 = arith.mulf %65, %69 : vector<8x16x8xf32>
    %71 = arith.addf %64, %70 : vector<8x16x8xf32>
    %c2 = arith.constant 2 : index
    %c7_45 = arith.constant 7 : index
    %c0_46 = arith.constant 0 : index
    %72 = vector.load %arg10[%c2, %c7_45, %c0_46] : memref<10x32x8xf32, #tpu.memory_space<vmem>>, vector<8x16x8xf32>
    %73 = vector.extract_strided_slice %25 {offsets = [6, 0], sizes = [1, 8], strides = [1, 1]} : vector<9x8xf32> to vector<1x8xf32>
    %74 = vector.shape_cast %73 : vector<1x8xf32> to vector<8xf32>
    %75 = vector.shape_cast %74 : vector<8xf32> to vector<1x1x8xf32>
    %76 = vector.broadcast %75 : vector<1x1x8xf32> to vector<8x16x8xf32>
    %77 = arith.mulf %72, %76 : vector<8x16x8xf32>
    %78 = arith.addf %71, %77 : vector<8x16x8xf32>
    %c2_47 = arith.constant 2 : index
    %c8_48 = arith.constant 8 : index
    %c0_49 = arith.constant 0 : index
    %79 = vector.load %arg10[%c2_47, %c8_48, %c0_49] : memref<10x32x8xf32, #tpu.memory_space<vmem>>, vector<8x16x8xf32>
    %80 = vector.extract_strided_slice %25 {offsets = [7, 0], sizes = [1, 8], strides = [1, 1]} : vector<9x8xf32> to vector<1x8xf32>
    %81 = vector.shape_cast %80 : vector<1x8xf32> to vector<8xf32>
    %82 = vector.shape_cast %81 : vector<8xf32> to vector<1x1x8xf32>
    %83 = vector.broadcast %82 : vector<1x1x8xf32> to vector<8x16x8xf32>
    %84 = arith.mulf %79, %83 : vector<8x16x8xf32>
    %85 = arith.addf %78, %84 : vector<8x16x8xf32>
    %c2_50 = arith.constant 2 : index
    %c9_51 = arith.constant 9 : index
    %c0_52 = arith.constant 0 : index
    %86 = vector.load %arg10[%c2_50, %c9_51, %c0_52] : memref<10x32x8xf32, #tpu.memory_space<vmem>>, vector<8x16x8xf32>
    %87 = vector.extract_strided_slice %25 {offsets = [8, 0], sizes = [1, 8], strides = [1, 1]} : vector<9x8xf32> to vector<1x8xf32>
    %88 = vector.shape_cast %87 : vector<1x8xf32> to vector<8xf32>
    %89 = vector.shape_cast %88 : vector<8xf32> to vector<1x1x8xf32>
    %90 = vector.broadcast %89 : vector<1x1x8xf32> to vector<8x16x8xf32>
    %91 = arith.mulf %86, %90 : vector<8x16x8xf32>
    %92 = arith.addf %85, %91 : vector<8x16x8xf32>
    %93 = vector.shape_cast %92 : vector<8x16x8xf32> to vector<1x8x16x8xf32>
    %c0_53 = arith.constant 0 : index
    %c0_54 = arith.constant 0 : index
    %c0_55 = arith.constant 0 : index
    %c0_56 = arith.constant 0 : index
    %94 = vector.load %arg9[%c0_53, %c0_54, %c0_55, %c0_56] : memref<1x8x16x8xf32, #tpu.memory_space<vmem>>, vector<1x8x16x8xf32>
    tpu.vector_store %arg9[%c0_53, %c0_54, %c0_55, %c0_56], %93 {strides = array<i32>} : memref<1x8x16x8xf32, #tpu.memory_space<vmem>>, vector<1x8x16x8xf32>,
    return
  }
  func.func @transform_0(%arg0: i32, %arg1: i32) -> (i32, i32, i32, i32) {
    %c8_i32 = arith.constant 8 : i32
    %0 = arith.muli %arg1, %c8_i32 : i32
    %c1_i32 = arith.constant 1 : i32
    %1 = arith.subi %0, %c1_i32 : i32
    %c0_i32 = arith.constant 0 : i32
    %2 = arith.maxsi %1, %c0_i32 : i32
    %c0_i32_0 = arith.constant 0 : i32
    %c0_i32_1 = arith.constant 0 : i32
    %c0_i32_2 = arith.constant 0 : i32
    return %arg0, %2, %c0_i32_0, %c0_i32_1 : i32, i32, i32, i32
  }
  func.func @transform_1(%arg0: i32, %arg1: i32) -> (i32, i32, i32, i32) {
    %c0_i32 = arith.constant 0 : i32
    %c0_i32_0 = arith.constant 0 : i32
    %c0_i32_1 = arith.constant 0 : i32
    return %arg0, %arg1, %c0_i32, %c0_i32_0 : i32, i32, i32, i32
  }
  func.func @transform_2(%arg0: i32, %arg1: i32) -> (i32, i32, i32, i32) {
    %c1_i32 = arith.constant 1 : i32
    %0 = arith.addi %arg1, %c1_i32 : i32
    %c8_i32 = arith.constant 8 : i32
    %1 = arith.muli %0, %c8_i32 : i32
    %c15_i32 = arith.constant 15 : i32
    %2 = arith.minsi %1, %c15_i32 : i32
    %c0_i32 = arith.constant 0 : i32
    %c0_i32_0 = arith.constant 0 : i32
    %c0_i32_1 = arith.constant 0 : i32
    return %arg0, %2, %c0_i32, %c0_i32_0 : i32, i32, i32, i32
  }
  func.func @transform_3(%arg0: i32, %arg1: i32) -> (i32, i32) {
    %c0_i32 = arith.constant 0 : i32
    %c0_i32_0 = arith.constant 0 : i32
    %c0_i32_1 = arith.constant 0 : i32
    return %c0_i32, %c0_i32_0 : i32, i32
  }
  func.func @transform_4(%arg0: i32, %arg1: i32) -> (i32, i32) {
    %c0_i32 = arith.constant 0 : i32
    %c0_i32_0 = arith.constant 0 : i32
    %c0_i32_1 = arith.constant 0 : i32
    return %c0_i32, %c0_i32_0 : i32, i32
  }
  func.func @transform_5(%arg0: i32, %arg1: i32) -> (i32, i32) {
    %c0_i32 = arith.constant 0 : i32
    %c0_i32_0 = arith.constant 0 : i32
    %c0_i32_1 = arith.constant 0 : i32
    return %c0_i32, %c0_i32_0 : i32, i32
  }
  func.func @transform_6(%arg0: i32, %arg1: i32) -> (i32, i32) {
    %c0_i32 = arith.constant 0 : i32
    %c0_i32_0 = arith.constant 0 : i32
    %c0_i32_1 = arith.constant 0 : i32
    return %c0_i32, %c0_i32_0 : i32, i32
  }
  func.func @transform_7(%arg0: i32, %arg1: i32) -> (i32, i32, i32, i32) {
    %c0_i32 = arith.constant 0 : i32
    %c0_i32_0 = arith.constant 0 : i32
    %c0_i32_1 = arith.constant 0 : i32
    return %arg0, %arg1, %c0_i32, %c0_i32_0 : i32, i32, i32, i32
  }
}

</mosaic_0001>

<bundles_post_ra>
// kernel: tpu_custom_call.1
= control target key start
LH: loop header
LB: loop body
LE: loop exit
PB: predicated region body
PF: predicated region fallthrough
CT: control target
= control target key end

     0   :  { %s1643_s24 = smov 0   ;;  %s1645_s25 = smov 0   ;;  %s2035_s0 = inlined_call_operand.vmem [shape: f32[2,16,16,8], index: 0, kind: input, shape index: {}]   ;;  %s2036_s1 = inlined_call_operand.vmem [shape: f32[2,16,16,8], index: 1, kind: input, shape index: {}]   ;;  %s2037_s2 = inlined_call_operand.vmem [shape: f32[2,16,16,8], index: 2, kind: input, shape index: {}]   ;;  %s2038_s3 = inlined_call_operand.vmem [shape: f32[8,8], index: 3, kind: input, shape index: {}]   ;;  %s2039_s4 = inlined_call_operand.vmem [shape: f32[1,8], index: 4, kind: input, shape index: {}]   ;;  %s2040_s5 = inlined_call_operand.vmem [shape: f32[9,8], index: 5, kind: input, shape index: {}]   ;;  %s2041_s6 = inlined_call_operand.vmem [shape: f32[1,8], index: 6, kind: input, shape index: {}]   ;;  %s2042_s7 = inlined_call_operand.vmem [shape: f32[2,16,16,8], index: 7, kind: output, shape index: {}]  }
   0x1   :  { %s1647_s26 = smov 0   ;;  %s1649_s27 = smov 0  }
   0x2   :  { %s1651_s28 = smov 0  }
   0x3 LB: > { %s26_s29 = sadd.s32 1, %s1590_s26  ;;  %s29_s30 = sadd.s32 1, %s1594_s27  ;;  %s1598_s28 = sphi %s1651_s28, %s17_s28   ;;  %s1594_s27 = sphi %s1649_s27, %s2047_s27   ;;  %s1590_s26 = sphi %s1647_s26, %s2046_s26   ;;  %s1586_s25 = sphi %s1645_s25, %s2045_s25   ;;  %s1582_s24 = sphi %s1643_s24, %s2044_s24  }
   0x4   : > { %p27_p0 = scmp.ge.s32.totalorder %s26_s29, 2  ;;  %p1401_p1 = scmp.ge.s32.totalorder %s1598_s28, 1 }
   0x5   : > { %p323_p2 = scmp.lt.s32.totalorder %s1598_s28, 5 }
   0x6   : > { %s2049_s29 = smov (%p27_p0, %s26_s29), 0  ;;  %s2051_s30 = smov (!%p27_p0, %s29_s30), %s1594_s27 }
   0x7   : > { %p324_p3 = pnand %p1401_p1, %p323_p2  ;;  %p31_p4 = scmp.ge.s32.totalorder %s2051_s30, 2 }
   0x8   : > { %v467_v0 = vld [vmem:[%s2038_s3] sm:$0xff] (!%p324_p3)  ;;  %s1402_s10 = sshll.u32 (!%p324_p3), %s1582_s24, 3  ;;  %p395_p5 = scmp.lt.s32.totalorder (!%p324_p3), %s1586_s25, 1  ;;  %vm475_vm0 = vcmask (!%p324_p3), 64512   ;;  %vm721_vm1 = vcmask (!%p324_p3), 57344   ;;  %v1600_v21 = vmov (!%p324_p3), 0.0  }
   0x9   : > { %s2053_s30 = smov (%p31_p4, %s2051_s30), 0  ;;  %327 = sbr.rel (%p324_p3) target bundleno = 364 (0x16c), region = 48 }
   0xa   : > { %1515 = vmatprep.subr.mxu1 (!%p324_p3), %v467_v0  ;;  %1483 = vmatprep.subr.mxu0 (!%p324_p3), %v467_v0  ;;  %p411_p6 = scmp.lt.s32.totalorder (!%p324_p3), %s1402_s10, 15  ;;  %s1403_s11 = sadd.s32 (!%p324_p3), 4294967295, %s1402_s10  ;;  %722 = vst.msk [vmem:[#allocation2 + $0x7] sm:$0x1] (!%p324_p3), %vm721_vm1, %v1600_v21  ;;  %723 = vst.msk [vmem:[#allocation2 + $0x27] sm:$0x1] (!%p324_p3), %vm721_vm1, %v1600_v21 }
   0xb   : > { %1516 = vmatpush3.msra.mxu1 (!%p324_p3), %v467_v0  ;;  %1484 = vmatpush3.msra.mxu0 (!%p324_p3), %v467_v0  ;;  %p393_p7 = scmp.gt.s32.totalorder (!%p324_p3), %s1403_s11, 0  ;;  %p1404_p8 = scmp.lt.s32.totalorder (!%p324_p3), %s1403_s11, 15  ;;  %724 = vst.msk [vmem:[#allocation2 + $0x47] sm:$0x1] (!%p324_p3), %vm721_vm1, %v1600_v21  ;;  %725 = vst.msk [vmem:[#allocation2 + $0x67] sm:$0x1] (!%p324_p3), %vm721_vm1, %v1600_v21 }
   0xc   : > { %s1461_s16 = sadd.s32 (!%p324_p3), 8, %s1402_s10  ;;  %726 = vst.msk [vmem:[#allocation2 + $0x87] sm:$0x1] (!%p324_p3), %vm721_vm1, %v1600_v21  ;;  %727 = vst.msk [vmem:[#allocation2 + $0xa7] sm:$0x1] (!%p324_p3), %vm721_vm1, %v1600_v21  ;;  %p1448_p10 = scmp.ne.s32.totalorder (!%p324_p3), %s1582_s24, 0 }
   0xd   : > { %p1682_p9 = scmp.lt.s32.totalorder (!%p324_p3), %s1461_s16, 15  ;;  %728 = vst.msk [vmem:[#allocation2 + $0xc7] sm:$0x1] (!%p324_p3), %vm721_vm1, %v1600_v21  ;;  %729 = vst.msk [vmem:[#allocation2 + $0xe7] sm:$0x1] (!%p324_p3), %vm721_vm1, %v1600_v21 }
   0xe   : > { %730 = vst.msk [vmem:[#allocation2 + $0x107] sm:$0x1] (!%p324_p3), %vm721_vm1, %v1600_v21  ;;  %731 = vst.msk [vmem:[#allocation2 + $0x127] sm:$0x1] (!%p324_p3), %vm721_vm1, %v1600_v21  ;;  %v1427_v22 = vld [vmem:[%s2039_s4] ss:$0 sm:$0xff] (!%p324_p3) }
   0xf   : > { %732 = vst.msk [vmem:[#allocation2 + $0x18] sm:$0x1] (!%p324_p3), %vm721_vm1, %v1600_v21  ;;  %733 = vst.msk [vmem:[#allocation2 + $0x38] sm:$0x1] (!%p324_p3), %vm721_vm1, %v1600_v21 }
  0x10   : > { %s2055_s25 = smov (!%p395_p5, %s1586_s25), 1  ;;  %s2057_s16 = smov (!%p1682_p9, %s1461_s16), 15  ;;  %734 = vst.msk [vmem:[#allocation2 + $0x58] sm:$0x1] %vm721_vm1, %v1600_v21  ;;  %735 = vst.msk [vmem:[#allocation2 + $0x78] sm:$0x1] %vm721_vm1, %v1600_v21 }
  0x11   : > { %s412_s12 = scalar_select %p411_p6, %s1402_s10, 15  ;;  %736 = vst.msk [vmem:[#allocation2 + $0x98] sm:$0x1] %vm721_vm1, %v1600_v21  ;;  %737 = vst.msk [vmem:[#allocation2 + $0xb8] sm:$0x1] %vm721_vm1, %v1600_v21 }
  0x12   : > { %s1679_s13 = sshll.u32 %s2055_s25, 5  ;;  %s2061_s16 = smov (!%p1682_p9, %s2057_s16), 15  ;;  %738 = vst.msk [vmem:[#allocation2 + $0xd8] sm:$0x1] %vm721_vm1, %v1600_v21  ;;  %739 = vst.msk [vmem:[#allocation2 + $0xf8] sm:$0x1] %vm721_vm1, %v1600_v21 }
  0x13   : > { %s1413_s14 = sshll.u32 %s412_s12, 1  ;;  %s1420_s12 = sshll.u32 %s2061_s16, 1  ;;  %740 = vst.msk [vmem:[#allocation2 + $0x118] sm:$0x1] %vm721_vm1, %v1600_v21  ;;  %741 = vst.msk [vmem:[#allocation2 + $0x138] sm:$0x1] %vm721_vm1, %v1600_v21 }
  0x14   : > { %s415_s15 = sadd.s32 %s1413_s14, %s1679_s13  ;;  %v1601_v63 = vmov (!%p1448_p10), 0.0  }
  0x15   : > { %s1415_s17 = sshll.u32 %s415_s15, 3  ;;  %s429_s15 = sadd.s32 %s1420_s12, %s1679_s13 }
  0x16   : > { %s1689_s21 = scalar_lea.vmem %s2036_s1, %s1415_s17  ;;  %s1694_s25 = scalar_lea.vmem %s2042_s7, %s1415_s17 }
  0x17   : > { %v457_v1 = vld [vmem:[%s1689_s21 + $0x40] sm:$0xff]  ;;  %s394_s8 = scalar_select %p393_p7, %s1403_s11, 0  ;;  %v458_v2 = vld [vmem:[%s1689_s21 + $0x48] sm:$0xff]  ;;  %v459_v3 = vld [vmem:[%s1689_s21 + $0x50] sm:$0xff] }
  0x18   : > { %1500 = vmatprep.mubr.msk.f32.mxu1 %vm475_vm0, %v457_v1  ;;  %v460_v4 = vld [vmem:[%s1689_s21 + $0x58] sm:$0xff]  ;;  %v461_v5 = vld [vmem:[%s1689_s21 + $0x60] sm:$0xff]  ;;  %v462_v7 = vld [vmem:[%s1689_s21 + $0x68] sm:$0xff]  ;;  %s1422_s18 = sshll.u32 %s429_s15, 3 }
  0x19   : > { %s2059_s8 = smov (!%p1404_p8, %s394_s8), 15  ;;  %1501 = vmatmul.mubr.msk.f32.vlgmr.msra.gmra.mrb[0].mxu1 %vm475_vm0, %v458_v2  ;;  %v449_v6 = vld [vmem:[%s1689_s21] sm:$0xff]  ;;  %v463_v10 = vld [vmem:[%s1689_s21 + $0x70] sm:$0xff]  ;;  %v450_v11 = vld [vmem:[%s1689_s21 + $0x8] sm:$0xff] }
  0x1a   : > { %1503 = vmatprep.mubr.msk.f32.mxu1 %vm475_vm0, %v459_v3  ;;  %s1409_s9 = sshll.u32 %s2059_s8, 1  ;;  %v464_v12 = vld [vmem:[%s1689_s21 + $0x78] sm:$0xff]  ;;  %v451_v13 = vld [vmem:[%s1689_s21 + $0x10] sm:$0xff]  ;;  %v453_v17 = vld [vmem:[%s1689_s21 + $0x20] sm:$0xff] }
  0x1b   : > { %s401_s10 = sadd.s32 %s1679_s13, %s1409_s9  ;;  %s431_s13 = scalar_lea.vmem %s2037_s2, %s1422_s18  ;;  %v452_v15 = vld [vmem:[%s1689_s21 + $0x18] sm:$0xff]  ;;  %v454_v18 = vld [vmem:[%s1689_s21 + $0x28] sm:$0xff]  ;;  %v455_v19 = vld [vmem:[%s1689_s21 + $0x30] sm:$0xff] }
  0x1c   : > { %s1411_s14 = sshll.u32 %s401_s10, 3  ;;  %v465_v14 = vld [vmem:[%s431_s13] sm:$0xff]  ;;  %v466_v16 = vld [vmem:[%s431_s13 + $0x8] sm:$0xff]  ;;  %v456_v20 = vld [vmem:[%s1689_s21 + $0x38] sm:$0xff] }
  0x1d   : > { %1504 = vmatmul.mubr.msk.f32.gmra.mrb[2].mxu1 %vm475_vm0, %v460_v4  ;;  %s403_s19 = scalar_lea.vmem %s2035_s0, %s1411_s14 }
  0x1e   : > { %1506 = vmatprep.mubr.msk.f32.mxu1 %vm475_vm0, %v461_v5  ;;  %v447_v8 = vld [vmem:[%s403_s19] sm:$0xff]  ;;  %v448_v9 = vld [vmem:[%s403_s19 + $0x8] sm:$0xff] }
  0x1f   : > { %1485 = vmatprep.mubr.msk.f32.mxu0 %vm475_vm0, %v447_v8 }
  0x20   : > { %1486 = vmatmul.mubr.msk.f32.vlgmr.msra.gmra.mrb[0].mxu0 %vm475_vm0, %v448_v9 }
  0x21   : > { %1507 = vmatmul.mubr.msk.f32.gmra.mrb[4].mxu1 %vm475_vm0, %v462_v7  ;;  %1488 = vmatprep.mubr.msk.f32.mxu0 %vm475_vm0, %v449_v6 }
  0x22   : > { %1509 = vmatprep.mubr.msk.f32.mxu1 %vm475_vm0, %v463_v10 }
  0x24   : > { %1489 = vmatmul.mubr.msk.f32.gmra.mrb[2].mxu0 %vm475_vm0, %v450_v11 }
  0x25   : > { %1510 = vmatmul.mubr.msk.f32.gmra.mrb[6].mxu1 %vm475_vm0, %v464_v12  ;;  %1491 = vmatprep.mubr.msk.f32.mxu0 %vm475_vm0, %v451_v13 }
  0x26   : > { %1512 = vmatprep.mubr.msk.f32.mxu1 %vm475_vm0, %v465_v14 }
  0x28   : > { %1492 = vmatmul.mubr.msk.f32.gmra.mrb[4].mxu0 %vm475_vm0, %v452_v15 }
  0x29   : > { %1513 = vmatmul.mubr.msk.f32.gmra.mrb[8].mxu1 %vm475_vm0, %v466_v16  ;;  %1494 = vmatprep.mubr.msk.f32.mxu0 %vm475_vm0, %v453_v17 }
  0x2c   : > { %1495 = vmatmul.mubr.msk.f32.gmra.mrb[6].mxu0 %vm475_vm0, %v454_v18 }
  0x2d   : > { %1497 = vmatprep.mubr.msk.f32.mxu0 %vm475_vm0, %v455_v19 }
  0x30   : > { %1498 = vmatmul.mubr.msk.f32.gmra.mrb[8].mxu0 %vm475_vm0, %v456_v20 }
  0xec   : > { %v1502_v23 = vpop.f32.mrb[0].mxu1 }
  0xed   : > { %v658_v24 = vadd.f32 %v1502_v23, %v1427_v22  ;;  %v652_v25 = vpop.f32.mrb[1].mxu1 }
  0xee   : > { %v653_v26 = vadd.f32 %v1427_v22, %v652_v25 }
  0xef   : > { %712 = vst.msk [vmem:[#allocation2 + $0xb0] sm:$0xff] %vm475_vm0, %v658_v24 }
  0xf0   : > { %711 = vst.msk [vmem:[#allocation2 + $0xa8] sm:$0xff] %vm475_vm0, %v653_v26  ;;  %v1505_v27 = vpop.f32.mrb[2].mxu1 }
  0xf1   : > { %v668_v28 = vadd.f32 %v1505_v27, %v1427_v22  ;;  %v662_v29 = vpop.f32.mrb[3].mxu1 }
  0xf2   : > { %v663_v30 = vadd.f32 %v1427_v22, %v662_v29 }
  0xf3   : > { %714 = vst.msk [vmem:[#allocation2 + $0xd0] sm:$0xff] %vm475_vm0, %v668_v28  ;;  %v1487_v31 = vpop.f32.mrb[0].mxu0 }
  0xf4   : > { %713 = vst.msk [vmem:[#allocation2 + $0xc8] sm:$0xff] %vm475_vm0, %v663_v30  ;;  %v1508_v32 = vpop.f32.mrb[4].mxu1  ;;  %v608_v33 = vadd.f32 %v1487_v31, %v1427_v22  ;;  %v602_v34 = vpop.f32.mrb[1].mxu0 }
  0xf5   : > { %v678_v35 = vadd.f32 %v1508_v32, %v1427_v22  ;;  %v672_v36 = vpop.f32.mrb[5].mxu1  ;;  %v603_v37 = vadd.f32 %v1427_v22, %v602_v34 }
  0xf6   : > { %v673_v38 = vadd.f32 %v1427_v22, %v672_v36  ;;  %702 = vst.msk [vmem:[#allocation2 + $0x10] sm:$0xff] %vm475_vm0, %v608_v33 }
  0xf7   : > { %716 = vst.msk [vmem:[#allocation2 + $0xf0] sm:$0xff] %vm475_vm0, %v678_v35  ;;  %701 = vst.msk [vmem:[#allocation2 + $0x8] sm:$0xff] %vm475_vm0, %v603_v37  ;;  %v1490_v39 = vpop.f32.mrb[2].mxu0 }
  0xf8   : > { %715 = vst.msk [vmem:[#allocation2 + $0xe8] sm:$0xff] %vm475_vm0, %v673_v38  ;;  %v1511_v40 = vpop.f32.mrb[6].mxu1  ;;  %v618_v41 = vadd.f32 %v1490_v39, %v1427_v22  ;;  %v612_v42 = vpop.f32.mrb[3].mxu0  ;;  %746 = vst.msk [vmem:[#allocation2 + $0x8] sm:$0xff] (!%p1448_p10), %vm475_vm0, %v1601_v63 }
  0xf9   : > { %v688_v43 = vadd.f32 %v1511_v40, %v1427_v22  ;;  %v682_v44 = vpop.f32.mrb[7].mxu1  ;;  %v613_v45 = vadd.f32 %v1427_v22, %v612_v42  ;;  %747 = vst.msk [vmem:[#allocation2 + $0x10] sm:$0xff] (!%p1448_p10), %vm475_vm0, %v1601_v63 }
  0xfa   : > { %v683_v46 = vadd.f32 %v1427_v22, %v682_v44  ;;  %704 = vst.msk [vmem:[#allocation2 + $0x30] sm:$0xff] %vm475_vm0, %v618_v41 }
  0xfb   : > { %718 = vst.msk [vmem:[#allocation2 + $0x110] sm:$0xff] %vm475_vm0, %v688_v43  ;;  %703 = vst.msk [vmem:[#allocation2 + $0x28] sm:$0xff] %vm475_vm0, %v613_v45  ;;  %v1493_v47 = vpop.f32.mrb[4].mxu0 }
  0xfc   : > { %717 = vst.msk [vmem:[#allocation2 + $0x108] sm:$0xff] %vm475_vm0, %v683_v46  ;;  %v1514_v48 = vpop.f32.mrb[8].mxu1  ;;  %v628_v49 = vadd.f32 %v1493_v47, %v1427_v22  ;;  %v622_v50 = vpop.f32.mrb[5].mxu0 }
  0xfd   : > { %v698_v51 = vadd.f32 %v1514_v48, %v1427_v22  ;;  %v692_v52 = vpop.f32.mrb[9].mxu1  ;;  %v623_v53 = vadd.f32 %v1427_v22, %v622_v50 }
  0xfe   : > { %v693_v54 = vadd.f32 %v1427_v22, %v692_v52  ;;  %706 = vst.msk [vmem:[#allocation2 + $0x50] sm:$0xff] %vm475_vm0, %v628_v49 }
  0xff   : > { %720 = vst.msk [vmem:[#allocation2 + $0x130] sm:$0xff] %vm475_vm0, %v698_v51  ;;  %705 = vst.msk [vmem:[#allocation2 + $0x48] sm:$0xff] %vm475_vm0, %v623_v53  ;;  %v1496_v55 = vpop.f32.mrb[6].mxu0 }
 0x100   : > { %719 = vst.msk [vmem:[#allocation2 + $0x128] sm:$0xff] %vm475_vm0, %v693_v54  ;;  %v638_v56 = vadd.f32 %v1496_v55, %v1427_v22  ;;  %v632_v57 = vpop.f32.mrb[7].mxu0 }
 0x101   : > { %v633_v58 = vadd.f32 %v1427_v22, %v632_v57  ;;  %745 = sbr.rel (%p1448_p10) target bundleno = 264 (0x108), region = 52 }
 0x102   : > { %708 = vst.msk [vmem:[#allocation2 + $0x70] sm:$0xff] %vm475_vm0, %v638_v56 }
 0x103   : > { %707 = vst.msk [vmem:[#allocation2 + $0x68] sm:$0xff] %vm475_vm0, %v633_v58  ;;  %v1499_v59 = vpop.f32.mrb[8].mxu0 }
 0x104   : > { %v648_v60 = vadd.f32 %v1499_v59, %v1427_v22  ;;  %v642_v61 = vpop.f32.mrb[9].mxu0 }
 0x105   : > { %v643_v62 = vadd.f32 %v1427_v22, %v642_v61 }
 0x106   : > { %710 = vst.msk [vmem:[#allocation2 + $0x90] sm:$0xff] %vm475_vm0, %v648_v60 }
 0x107   : > { %709 = vst.msk [vmem:[#allocation2 + $0x88] sm:$0xff] %vm475_vm0, %v643_v62 }
 0x108 PF: > { %p1449_p11 = scmp.ne.s32.totalorder %s1582_s24, 1 }
 0x109   : > { %v1602_v0 = vmov (!%p1449_p11), 0.0  }
 0x10a   : > { %751 = sbr.rel (%p1449_p11) target bundleno = 273 (0x111), region = 56  ;;  %753 = vst.msk [vmem:[#allocation2 + $0x128] sm:$0xff] (!%p1449_p11), %vm475_vm0, %v1602_v0  ;;  %754 = vst.msk [vmem:[#allocation2 + $0x130] sm:$0xff] (!%p1449_p11), %vm475_vm0, %v1602_v0 }
 0x111 PF: > { %v780_v1 = vlaneseq  ;;  %v755_v3 = vld [vmem:[%s2040_s5] sm:$0xff]  ;;  %v816_v9 = vld [vmem:[#allocation2 + $0x8] sm:$0xff]  ;;  %v817_v24 = vld [vmem:[#allocation2 + $0x10] sm:$0xff] }
 0x112   : > { %v764_v8 = vld [vmem:[#allocation2 + $0x7] sm:$0xff]  ;;  %v1800_v14 = vld [vmem:[%s2041_s6] ss:$0 sm:$0xff]  ;;  %v765_v23 = vld [vmem:[#allocation2 + $0xf] sm:$0xff] }
 0x113   : > { %v781_v2 = vshrl.u32 %v780_v1, 7  ;;  %v868_v18 = vld [vmem:[#allocation2 + $0x9] sm:$0xff]  ;;  %v1823_v28 = vld [vmem:[%s2040_s5 + $0x8] ss:$0 sm:$0xff]  ;;  %v869_v30 = vld [vmem:[#allocation2 + $0x11] sm:$0xff] }
 0x114   : > { %v921_v29 = vld [vmem:[#allocation2 + $0x27] sm:$0xff]  ;;  %v922_v48 = vld [vmem:[#allocation2 + $0x2f] sm:$0xff] }
 0x115   : > { %v782_v4 = vsub.s32 0, %v781_v2  ;;  %v834_v5 = vsub.s32 1, %v781_v2  ;;  %v886_v6 = vsub.s32 2, %v781_v2  ;;  %v939_v7 = vsub.s32 3, %v781_v2  ;;  %v973_v33 = vld [vmem:[#allocation2 + $0x28] sm:$0xff]  ;;  %v974_v51 = vld [vmem:[#allocation2 + $0x30] sm:$0xff] }
 0x116   : > { %v991_v10 = vsub.s32 4, %v781_v2  ;;  %v1043_v11 = vsub.s32 5, %v781_v2  ;;  %v1096_v12 = vsub.s32 6, %v781_v2  ;;  %v1148_v13 = vsub.s32 7, %v781_v2  ;;  %v1025_v34 = vld [vmem:[#allocation2 + $0x29] sm:$0xff]  ;;  %v1026_v52 = vld [vmem:[#allocation2 + $0x31] sm:$0xff] }
 0x117   : > { %v1802_v15 = vrot.slane %v755_v3, %v782_v4  ;;  %v1804_v16 = vrot.slane %v755_v3, %v834_v5  ;;  %v1806_v17 = vrot.slane %v755_v3, %v886_v6  ;;  %v1808_v19 = vrot.slane %v755_v3, %v939_v7  ;;  %v1078_v35 = vld [vmem:[#allocation2 + $0x47] sm:$0xff]  ;;  %v1079_v59 = vld [vmem:[#allocation2 + $0x4f] sm:$0xff] }
 0x118   : > { %v1810_v20 = vrot.slane %v755_v3, %v991_v10  ;;  %v1812_v21 = vrot.slane %v755_v3, %v1043_v11  ;;  %v1814_v22 = vrot.slane %v755_v3, %v1096_v12  ;;  %v1818_v27 = vrot.slane %v755_v3, %v1148_v13  ;;  %v1130_v42 = vld [vmem:[#allocation2 + $0x48] sm:$0xff]  ;;  %v1131_v60 = vld [vmem:[#allocation2 + $0x50] sm:$0xff] }
 0x119   : > { %v784_v25 = vmul.f32 %v1802_v15, %v764_v8  ;;  %v836_v26 = vmul.f32 %v1804_v16, %v816_v9  ;;  %v888_v32 = vmul.f32 %v1806_v17, %v868_v18  ;;  %v785_v36 = vmul.f32 %v1802_v15, %v765_v23  ;;  %v1182_v45 = vld [vmem:[#allocation2 + $0x49] sm:$0xff]  ;;  %v1183_v63 = vld [vmem:[#allocation2 + $0x51] sm:$0xff] }
 0x11a   : > { %v837_v37 = vmul.f32 %v1804_v16, %v817_v24  ;;  %v941_v38 = vmul.f32 %v1808_v19, %v921_v29  ;;  %v993_v39 = vmul.f32 %v1810_v20, %v973_v33  ;;  %v1045_v40 = vmul.f32 %v1812_v21, %v1025_v34  ;;  %v1080_v12 = vld [vmem:[#allocation2 + $0x67] sm:$0xff] }
 0x11b   : > { %v800_v31 = vadd.f32 %v1800_v14, %v784_v25  ;;  %v1098_v41 = vmul.f32 %v1814_v22, %v1078_v35  ;;  %v1150_v44 = vmul.f32 %v1818_v27, %v1130_v42  ;;  %v801_v46 = vadd.f32 %v1800_v14, %v785_v36  ;;  %v1851_v13 = vld [vmem:[#allocation2 + $0x68] sm:$0xff] }
 0x11c   : > { %v889_v47 = vmul.f32 %v1806_v17, %v869_v30  ;;  %v1202_v49 = vmul.f32 %v1823_v28, %v1182_v45  ;;  %v942_v50 = vmul.f32 %v1808_v19, %v922_v48  ;;  %v786_v53 = vmul.f32 %v921_v29, %v1802_v15 }
 0x11d   : > { %v852_v43 = vadd.f32 %v836_v26, %v800_v31  ;;  %v838_v54 = vmul.f32 %v973_v33, %v1804_v16  ;;  %v853_v56 = vadd.f32 %v837_v37, %v801_v46  ;;  %v994_v57 = vmul.f32 %v1810_v20, %v974_v51 }
 0x11e   : > { %v1046_v58 = vmul.f32 %v1812_v21, %v1026_v52  ;;  %v1099_v61 = vmul.f32 %v1814_v22, %v1079_v59  ;;  %v1151_v62 = vmul.f32 %v1818_v27, %v1131_v60  ;;  %v802_v0 = vadd.f32 %v1800_v14, %v786_v53 }
 0x11f   : > { %v904_v55 = vadd.f32 %v888_v32, %v852_v43  ;;  %v890_v1 = vmul.f32 %v1025_v34, %v1806_v17  ;;  %v905_v3 = vadd.f32 %v889_v47, %v853_v56  ;;  %v1203_v4 = vmul.f32 %v1823_v28, %v1183_v63  ;;  %v1184_v32 = vld [vmem:[#allocation2 + $0x69] sm:$0xff] }
 0x120   : > { %v787_v5 = vmul.f32 %v922_v48, %v1802_v15  ;;  %v854_v6 = vadd.f32 %v838_v54, %v802_v0  ;;  %v943_v7 = vmul.f32 %v1078_v35, %v1808_v19  ;;  %v995_v8 = vmul.f32 %v1130_v42, %v1810_v20 }
 0x121   : > { %v957_v2 = vadd.f32 %v941_v38, %v904_v55  ;;  %v839_v9 = vmul.f32 %v974_v51, %v1804_v16  ;;  %v958_v11 = vadd.f32 %v942_v50, %v905_v3  ;;  %v891_v23 = vmul.f32 %v1026_v52, %v1806_v17  ;;  %v1081_v51 = vld [vmem:[#allocation2 + $0x6f] sm:$0xff] }
 0x122   : > { %v803_v18 = vadd.f32 %v1800_v14, %v787_v5  ;;  %v906_v24 = vadd.f32 %v890_v1, %v854_v6  ;;  %v1047_v25 = vmul.f32 %v1182_v45, %v1812_v21  ;;  %v1100_v26 = vmul.f32 %v1814_v22, %v1080_v12 }
 0x123   : > { %v1009_v10 = vadd.f32 %v993_v39, %v957_v2  ;;  %v1152_v29 = vmul.f32 %v1818_v27, %v1851_v13  ;;  %v1010_v31 = vadd.f32 %v994_v57, %v958_v11  ;;  %v944_v34 = vmul.f32 %v1079_v59, %v1808_v19 }
 0x124   : > { %v855_v33 = vadd.f32 %v839_v9, %v803_v18  ;;  %v959_v36 = vadd.f32 %v943_v7, %v906_v24  ;;  %v1204_v37 = vmul.f32 %v1823_v28, %v1184_v32  ;;  %v788_v38 = vmul.f32 %v1078_v35, %v1802_v15 }
 0x125   : > { %v1061_v30 = vadd.f32 %v1045_v40, %v1009_v10  ;;  %v840_v39 = vmul.f32 %v1130_v42, %v1804_v16  ;;  %v1062_v46 = vadd.f32 %v1046_v58, %v1010_v31  ;;  %v996_v48 = vmul.f32 %v1131_v60, %v1810_v20  ;;  %v1133_v42 = vld [vmem:[#allocation2 + $0x70] sm:$0xff]  ;;  %v1134_v31 = vld [vmem:[#allocation2 + $0x88] sm:$0xff] }
 0x126   : > { %v907_v47 = vadd.f32 %v891_v23, %v855_v33  ;;  %v1011_v50 = vadd.f32 %v995_v8, %v959_v36  ;;  %v1048_v40 = vmul.f32 %v1183_v63, %v1812_v21  ;;  %v804_v52 = vadd.f32 %v1800_v14, %v788_v38  ;;  %v1185_v10 = vld [vmem:[#allocation2 + $0x71] sm:$0xff] }
 0x127   : > { %v1114_v43 = vadd.f32 %v1098_v41, %v1061_v30  ;;  %v892_v53 = vmul.f32 %v1182_v45, %v1806_v17  ;;  %v1115_v55 = vadd.f32 %v1099_v61, %v1062_v46  ;;  %v1101_v35 = vmul.f32 %v1814_v22, %v1081_v51 }
 0x128   : > { %v960_v56 = vadd.f32 %v944_v34, %v907_v47  ;;  %v1063_v41 = vadd.f32 %v1047_v25, %v1011_v50  ;;  %v1153_v57 = vmul.f32 %v1818_v27, %v1133_v42  ;;  %v856_v58 = vadd.f32 %v840_v39, %v804_v52  ;;  %v1083_v52 = vld [vmem:[#allocation2 + $0x8f] sm:$0xff] }
 0x129   : > { %v1166_v54 = vadd.f32 %v1150_v44, %v1114_v43  ;;  %v945_v0 = vmul.f32 %v1080_v12, %v1808_v19  ;;  %v1167_v2 = vadd.f32 %v1151_v62, %v1115_v55  ;;  %v789_v5 = vmul.f32 %v1079_v59, %v1802_v15 }
 0x12a   : > { %v1012_v3 = vadd.f32 %v996_v48, %v960_v56  ;;  %v1116_v45 = vadd.f32 %v1100_v26, %v1063_v41  ;;  %v908_v44 = vadd.f32 %v892_v53, %v856_v58  ;;  %v997_v61 = vmul.f32 %v1851_v13, %v1810_v20  ;;  %v1135_v56 = vld [vmem:[#allocation2 + $0x90] sm:$0xff] }
 0x12b   : > { %v1218_v1 = vadd.f32 %v1202_v49, %v1166_v54  ;;  %v841_v6 = vmul.f32 %v1131_v60, %v1804_v16  ;;  %v1219_v7 = vadd.f32 %v1203_v4, %v1167_v2  ;;  %v805_v9 = vadd.f32 %v1800_v14, %v789_v5  ;;  %v1082_v60 = vld [vmem:[#allocation2 + $0x87] sm:$0xff]  ;;  %v1187_v58 = vld [vmem:[#allocation2 + $0x91] sm:$0xff] }
 0x12c   : > { %v1064_v8 = vadd.f32 %v1048_v40, %v1012_v3  ;;  %v893_v49 = vmul.f32 %v1183_v63, %v1806_v17  ;;  %v1168_v62 = vadd.f32 %v1152_v29, %v1116_v45  ;;  %v961_v11 = vadd.f32 %v945_v0, %v908_v44 }
 0x12d   : > { %1234 = vst.msk [vmem:[%s1694_s25] sm:$0xff] %vm475_vm0, %v1218_v1  ;;  %v1049_v59 = vmul.f32 %v1184_v32, %v1812_v21  ;;  %1235 = vst.msk [vmem:[%s1694_s25 + $0x8] sm:$0xff] %vm475_vm0, %v1219_v7  ;;  %v1205_v23 = vmul.f32 %v1823_v28, %v1185_v10  ;;  %v857_v24 = vadd.f32 %v841_v6, %v805_v9  ;;  %v1084_v7 = vld [vmem:[#allocation2 + $0xa7] sm:$0xff] }
 0x12e   : > { %v1117_v18 = vadd.f32 %v1101_v35, %v1064_v8  ;;  %v946_v4 = vmul.f32 %v1081_v51, %v1808_v19  ;;  %v1220_v25 = vadd.f32 %v1204_v37, %v1168_v62  ;;  %v1013_v26 = vadd.f32 %v997_v61, %v961_v11  ;;  %v1136_v8 = vld [vmem:[#allocation2 + $0xa8] sm:$0xff] }
 0x12f   : > { %v1102_v30 = vmul.f32 %v1814_v22, %v1082_v60  ;;  %v790_v63 = vmul.f32 %v1080_v12, %v1802_v15  ;;  %v909_v33 = vadd.f32 %v893_v49, %v857_v24  ;;  %v998_v34 = vmul.f32 %v1133_v42, %v1810_v20  ;;  %v1186_v12 = vld [vmem:[#allocation2 + $0x89] sm:$0xff] }
 0x130   : > { %v1169_v29 = vadd.f32 %v1153_v57, %v1117_v18  ;;  %v842_v36 = vmul.f32 %v1851_v13, %v1804_v16  ;;  %1236 = vst.msk [vmem:[%s1694_s25 + $0x10] sm:$0xff] %vm475_vm0, %v1220_v25  ;;  %v1065_v38 = vadd.f32 %v1049_v59, %v1013_v26  ;;  %v1154_v39 = vmul.f32 %v1818_v27, %v1134_v31  ;;  %v1188_v24 = vld [vmem:[#allocation2 + $0xa9] sm:$0xff] }
 0x131   : > { %v806_v37 = vadd.f32 %v1800_v14, %v790_v63  ;;  %v894_v43 = vmul.f32 %v1184_v32, %v1806_v17  ;;  %v962_v47 = vadd.f32 %v946_v4, %v909_v33  ;;  %v1050_v48 = vmul.f32 %v1185_v10, %v1812_v21 }
 0x132   : > { %v1221_v46 = vadd.f32 %v1205_v23, %v1169_v29  ;;  %v1118_v50 = vadd.f32 %v1102_v30, %v1065_v38  ;;  %v1206_v40 = vmul.f32 %v1823_v28, %v1186_v12  ;;  %v947_v13 = vmul.f32 %v1082_v60, %v1808_v19 }
 0x133   : > { %v858_v53 = vadd.f32 %v842_v36, %v806_v37  ;;  %v1014_v54 = vadd.f32 %v998_v34, %v962_v47  ;;  %v1103_v55 = vmul.f32 %v1814_v22, %v1083_v52  ;;  %v791_v32 = vmul.f32 %v1081_v51, %v1802_v15  ;;  %v1085_v34 = vld [vmem:[#allocation2 + $0xaf] sm:$0xff] }
 0x134   : > { %1237 = vst.msk [vmem:[%s1694_s25 + $0x18] sm:$0xff] %vm475_vm0, %v1221_v46  ;;  %v843_v35 = vmul.f32 %v1133_v42, %v1804_v16  ;;  %v1170_v41 = vadd.f32 %v1154_v39, %v1118_v50  ;;  %v1155_v57 = vmul.f32 %v1818_v27, %v1135_v56  ;;  %v999_v1 = vmul.f32 %v1134_v31, %v1810_v20  ;;  %v1137_v47 = vld [vmem:[#allocation2 + $0xb0] sm:$0xff] }
 0x135   : > { %v910_v0 = vadd.f32 %v894_v43, %v858_v53  ;;  %v1066_v2 = vadd.f32 %v1050_v48, %v1014_v54  ;;  %v1207_v3 = vmul.f32 %v1823_v28, %v1187_v58  ;;  %v807_v5 = vadd.f32 %v1800_v14, %v791_v32  ;;  %v1189_v48 = vld [vmem:[#allocation2 + $0xb1] sm:$0xff] }
 0x136   : > { %v895_v45 = vmul.f32 %v1185_v10, %v1806_v17  ;;  %v1222_v44 = vadd.f32 %v1206_v40, %v1170_v41  ;;  %v1051_v51 = vmul.f32 %v1186_v12, %v1812_v21  ;;  %v948_v42 = vmul.f32 %v1083_v52, %v1808_v19 }
 0x137   : > { %v963_v61 = vadd.f32 %v947_v13, %v910_v0  ;;  %v1119_v6 = vadd.f32 %v1103_v55, %v1066_v2  ;;  %v859_v9 = vadd.f32 %v843_v35, %v807_v5  ;;  %v792_v49 = vmul.f32 %v1082_v60, %v1802_v15  ;;  %v1086_v35 = vld [vmem:[#allocation2 + $0xc7] sm:$0xff] }
 0x138   : > { %v844_v62 = vmul.f32 %v1134_v31, %v1804_v16  ;;  %1238 = vst.msk [vmem:[%s1694_s25 + $0x20] sm:$0xff] %vm475_vm0, %v1222_v44  ;;  %v1104_v59 = vmul.f32 %v1814_v22, %v1084_v7  ;;  %v1156_v10 = vmul.f32 %v1818_v27, %v1136_v8  ;;  %v1000_v18 = vmul.f32 %v1135_v56, %v1810_v20  ;;  %v1190_v44 = vld [vmem:[#allocation2 + $0xc9] sm:$0xff] }
 0x139   : > { %v1015_v11 = vadd.f32 %v999_v1, %v963_v61  ;;  %v1171_v23 = vadd.f32 %v1155_v57, %v1119_v6  ;;  %v911_v4 = vadd.f32 %v895_v45, %v859_v9  ;;  %v808_v25 = vadd.f32 %v1800_v14, %v792_v49  ;;  %v1138_v45 = vld [vmem:[#allocation2 + $0xc8] sm:$0xff] }
 0x13a   : > { %v896_v26 = vmul.f32 %v1186_v12, %v1806_v17  ;;  %v1208_v30 = vmul.f32 %v1823_v28, %v1188_v24  ;;  %v1052_v63 = vmul.f32 %v1187_v58, %v1812_v21  ;;  %v949_v29 = vmul.f32 %v1084_v7, %v1808_v19 }
 0x13b   : > { %v1067_v60 = vadd.f32 %v1051_v51, %v1015_v11  ;;  %v1223_v31 = vadd.f32 %v1207_v3, %v1171_v23  ;;  %v964_v33 = vadd.f32 %v948_v42, %v911_v4  ;;  %v860_v36 = vadd.f32 %v844_v62, %v808_v25 }
 0x13c   : > { %v793_v38 = vmul.f32 %v1083_v52, %v1802_v15  ;;  %v1105_v37 = vmul.f32 %v1814_v22, %v1085_v34  ;;  %v1001_v43 = vmul.f32 %v1136_v8, %v1810_v20  ;;  %v845_v46 = vmul.f32 %v1135_v56, %v1804_v16 }
 0x13d   : > { %v1120_v39 = vadd.f32 %v1104_v59, %v1067_v60  ;;  %1239 = vst.msk [vmem:[%s1694_s25 + $0x28] sm:$0xff] %vm475_vm0, %v1223_v31  ;;  %v1016_v12 = vadd.f32 %v1000_v18, %v964_v33  ;;  %v912_v50 = vadd.f32 %v896_v26, %v860_v36  ;;  %v897_v53 = vmul.f32 %v1187_v58, %v1806_v17  ;;  %v1087_v59 = vld [vmem:[#allocation2 + $0xcf] sm:$0xff] }
 0x13e   : > { %v809_v40 = vadd.f32 %v1800_v14, %v793_v38  ;;  %v1157_v52 = vmul.f32 %v1818_v27, %v1137_v47  ;;  %v1209_v54 = vmul.f32 %v1823_v28, %v1189_v48  ;;  %v1053_v55 = vmul.f32 %v1188_v24, %v1812_v21 }
 0x13f   : > { %v1172_v13 = vadd.f32 %v1156_v10, %v1120_v39  ;;  %v1068_v32 = vadd.f32 %v1052_v63, %v1016_v12  ;;  %v965_v56 = vadd.f32 %v949_v29, %v912_v50  ;;  %v950_v57 = vmul.f32 %v1085_v34, %v1808_v19  ;;  %v1191_v63 = vld [vmem:[#allocation2 + $0xd1] sm:$0xff] }
 0x140   : > { %v861_v41 = vadd.f32 %v845_v46, %v809_v40  ;;  %v1106_v1 = vmul.f32 %v1814_v22, %v1086_v35  ;;  %v794_v2 = vmul.f32 %v1084_v7, %v1802_v15  ;;  %v846_v58 = vmul.f32 %v1136_v8, %v1804_v16 }
 0x141   : > { %v1224_v0 = vadd.f32 %v1208_v30, %v1172_v13  ;;  %v1121_v3 = vadd.f32 %v1105_v37, %v1068_v32  ;;  %v1017_v5 = vadd.f32 %v1001_v43, %v965_v56  ;;  %v1002_v51 = vmul.f32 %v1137_v47, %v1810_v20 }
 0x142   : > { %v913_v61 = vadd.f32 %v897_v53, %v861_v41  ;;  %v1158_v42 = vmul.f32 %v1818_v27, %v1138_v45  ;;  %v1210_v6 = vmul.f32 %v1823_v28, %v1190_v44  ;;  %v810_v9 = vadd.f32 %v1800_v14, %v794_v2  ;;  %v1088_v53 = vld [vmem:[#allocation2 + $0xe7] sm:$0xff] }
 0x143   : > { %1240 = vst.msk [vmem:[%s1694_s25 + $0x30] sm:$0xff] %vm475_vm0, %v1224_v0  ;;  %v898_v49 = vmul.f32 %v1188_v24, %v1806_v17  ;;  %v1173_v7 = vadd.f32 %v1157_v52, %v1121_v3  ;;  %v1069_v62 = vadd.f32 %v1053_v55, %v1017_v5  ;;  %v1054_v11 = vmul.f32 %v1189_v48, %v1812_v21  ;;  %v1139_v24 = vld [vmem:[#allocation2 + $0xd0] sm:$0xff]  ;;  %v1140_v55 = vld [vmem:[#allocation2 + $0xe8] sm:$0xff] }
 0x144   : > { %v966_v8 = vadd.f32 %v950_v57, %v913_v61  ;;  %v862_v10 = vadd.f32 %v846_v58, %v810_v9  ;;  %v951_v18 = vmul.f32 %v1086_v35, %v1808_v19  ;;  %v795_v23 = vmul.f32 %v1085_v34, %v1802_v15  ;;  %v1192_v0 = vld [vmem:[#allocation2 + $0xe9] sm:$0xff] }
 0x145   : > { %v847_v4 = vmul.f32 %v1137_v47, %v1804_v16  ;;  %v1225_v25 = vadd.f32 %v1209_v54, %v1173_v7  ;;  %v1122_v26 = vadd.f32 %v1106_v1, %v1069_v62  ;;  %v1107_v30 = vmul.f32 %v1814_v22, %v1087_v59  ;;  %v1089_v61 = vld [vmem:[#allocation2 + $0xef] sm:$0xff] }
 0x146   : > { %v1018_v60 = vadd.f32 %v1002_v51, %v966_v8  ;;  %v914_v29 = vadd.f32 %v898_v49, %v862_v10  ;;  %v1003_v31 = vmul.f32 %v1138_v45, %v1810_v20  ;;  %v811_v33 = vadd.f32 %v1800_v14, %v795_v23  ;;  %v1193_v8 = vld [vmem:[#allocation2 + $0xf1] sm:$0xff] }
 0x147   : > { %v899_v36 = vmul.f32 %v1189_v48, %v1806_v17  ;;  %1241 = vst.msk [vmem:[%s1694_s25 + $0x38] sm:$0xff] %vm475_vm0, %v1225_v25  ;;  %v1174_v38 = vadd.f32 %v1158_v42, %v1122_v26  ;;  %v1159_v39 = vmul.f32 %v1818_v27, %v1139_v24  ;;  %v1211_v37 = vmul.f32 %v1823_v28, %v1191_v63 }
 0x148   : > { %v1070_v34 = vadd.f32 %v1054_v11, %v1018_v60  ;;  %v967_v43 = vadd.f32 %v951_v18, %v914_v29  ;;  %v1055_v46 = vmul.f32 %v1190_v44, %v1812_v21  ;;  %v863_v12 = vadd.f32 %v847_v4, %v811_v33 }
 0x149   : > { %v952_v47 = vmul.f32 %v1087_v59, %v1808_v19  ;;  %v1226_v50 = vadd.f32 %v1210_v6, %v1174_v38  ;;  %v796_v48 = vmul.f32 %v1086_v35, %v1802_v15  ;;  %v848_v13 = vmul.f32 %v1138_v45, %v1804_v16 }
 0x14a   : > { %v1123_v40 = vadd.f32 %v1107_v30, %v1070_v34  ;;  %v1019_v52 = vadd.f32 %v1003_v31, %v967_v43  ;;  %v1108_v54 = vmul.f32 %v1814_v22, %v1088_v53  ;;  %v915_v32 = vadd.f32 %v899_v36, %v863_v12  ;;  %v1090_v36 = vld [vmem:[#allocation2 + $0x107] sm:$0xff] }
 0x14b   : > { %v1004_v56 = vmul.f32 %v1139_v24, %v1810_v20  ;;  %1242 = vst.msk [vmem:[%s1694_s25 + $0x40] sm:$0xff] %vm475_vm0, %v1226_v50  ;;  %v1160_v57 = vmul.f32 %v1818_v27, %v1140_v55  ;;  %v812_v1 = vadd.f32 %v1800_v14, %v796_v48  ;;  %v900_v35 = vmul.f32 %v1190_v44, %v1806_v17  ;;  %v1141_v44 = vld [vmem:[#allocation2 + $0xf0] sm:$0xff] }
 0x14c   : > { %v1175_v41 = vadd.f32 %v1159_v39, %v1123_v40  ;;  %v1071_v2 = vadd.f32 %v1055_v46, %v1019_v52  ;;  %v1212_v58 = vmul.f32 %v1823_v28, %v1192_v0  ;;  %v968_v3 = vadd.f32 %v952_v47, %v915_v32  ;;  %v1194_v50 = vld [vmem:[#allocation2 + $0x109] sm:$0xff] }
 0x14d   : > { %v1056_v5 = vmul.f32 %v1191_v63, %v1812_v21  ;;  %v864_v51 = vadd.f32 %v848_v13, %v812_v1  ;;  %v953_v42 = vmul.f32 %v1088_v53, %v1808_v19  ;;  %v797_v6 = vmul.f32 %v1087_v59, %v1802_v15  ;;  %v1091_v32 = vld [vmem:[#allocation2 + $0x10f] sm:$0xff] }
 0x14e   : > { %v1227_v45 = vadd.f32 %v1211_v37, %v1175_v41  ;;  %v1124_v9 = vadd.f32 %v1108_v54, %v1071_v2  ;;  %v1020_v49 = vadd.f32 %v1004_v56, %v968_v3  ;;  %v1109_v7 = vmul.f32 %v1814_v22, %v1089_v61  ;;  %v1142_v37 = vld [vmem:[#allocation2 + $0x108] sm:$0xff] }
 0x14f   : > { %v849_v62 = vmul.f32 %v1139_v24, %v1804_v16  ;;  %v916_v11 = vadd.f32 %v900_v35, %v864_v51  ;;  %v1005_v10 = vmul.f32 %v1140_v55, %v1810_v20  ;;  %v813_v18 = vadd.f32 %v1800_v14, %v797_v6 }
 0x150   : > { %1243 = vst.msk [vmem:[%s1694_s25 + $0x48] sm:$0xff] %vm475_vm0, %v1227_v45  ;;  %v901_v23 = vmul.f32 %v1191_v63, %v1806_v17  ;;  %v1176_v4 = vadd.f32 %v1160_v57, %v1124_v9  ;;  %v1072_v25 = vadd.f32 %v1056_v5, %v1020_v49  ;;  %v1161_v59 = vmul.f32 %v1818_v27, %v1141_v44  ;;  %v1195_v9 = vld [vmem:[#allocation2 + $0x111] sm:$0xff] }
 0x151   : > { %v1213_v26 = vmul.f32 %v1823_v28, %v1193_v8  ;;  %v969_v60 = vadd.f32 %v953_v42, %v916_v11  ;;  %v1057_v30 = vmul.f32 %v1192_v0, %v1812_v21  ;;  %v865_v24 = vadd.f32 %v849_v62, %v813_v18 }
 0x152   : > { %v954_v29 = vmul.f32 %v1089_v61, %v1808_v19  ;;  %v1228_v31 = vadd.f32 %v1212_v58, %v1176_v4  ;;  %v1125_v33 = vadd.f32 %v1109_v7, %v1072_v25  ;;  %v798_v38 = vmul.f32 %v1088_v53, %v1802_v15  ;;  %v1196_v25 = vld [vmem:[#allocation2 + $0x129] sm:$0xff] }
 0x153   : > { %v850_v63 = vmul.f32 %v1140_v55, %v1804_v16  ;;  %v1021_v34 = vadd.f32 %v1005_v10, %v969_v60  ;;  %v1110_v39 = vmul.f32 %v1814_v22, %v1090_v36  ;;  %v917_v43 = vadd.f32 %v901_v23, %v865_v24 }
 0x154   : > { %v1006_v46 = vmul.f32 %v1141_v44, %v1810_v20  ;;  %1244 = vst.msk [vmem:[%s1694_s25 + $0x50] sm:$0xff] %vm475_vm0, %v1228_v31  ;;  %v1177_v12 = vadd.f32 %v1161_v59, %v1125_v33  ;;  %v1162_v47 = vmul.f32 %v1818_v27, %v1142_v37  ;;  %v814_v40 = vadd.f32 %v1800_v14, %v798_v38  ;;  %v1093_v59 = vld [vmem:[#allocation2 + $0x12f] sm:$0xff] }
 0x155   : > { %v902_v53 = vmul.f32 %v1192_v0, %v1806_v17  ;;  %v1073_v48 = vadd.f32 %v1057_v30, %v1021_v34  ;;  %v1214_v13 = vmul.f32 %v1823_v28, %v1194_v50  ;;  %v970_v52 = vadd.f32 %v954_v29, %v917_v43  ;;  %v1143_v0 = vld [vmem:[#allocation2 + $0x110] sm:$0xff] }
 0x156   : > { %v1058_v54 = vmul.f32 %v1193_v8, %v1812_v21  ;;  %v1229_v55 = vadd.f32 %v1213_v26, %v1177_v12  ;;  %v866_v56 = vadd.f32 %v850_v63, %v814_v40  ;;  %v955_v41 = vmul.f32 %v1090_v36, %v1808_v19  ;;  %v1145_v29 = vld [vmem:[#allocation2 + $0x130] sm:$0xff] }
 0x157   : > { %v799_v57 = vmul.f32 %v1089_v61, %v1802_v15  ;;  %v1126_v1 = vadd.f32 %v1110_v39, %v1073_v48  ;;  %v1022_v35 = vadd.f32 %v1006_v46, %v970_v52  ;;  %v1111_v2 = vmul.f32 %v1814_v22, %v1091_v32  ;;  %v1092_v61 = vld [vmem:[#allocation2 + $0x127] sm:$0xff]  ;;  %v1197_v38 = vld [vmem:[#allocation2 + $0x131] sm:$0xff] }
 0x158   : > { %v851_v58 = vmul.f32 %v1141_v44, %v1804_v16  ;;  %1245 = vst.msk [vmem:[%s1694_s25 + $0x58] sm:$0xff] %vm475_vm0, %v1229_v55  ;;  %v918_v3 = vadd.f32 %v902_v53, %v866_v56  ;;  %v1007_v5 = vmul.f32 %v1142_v37, %v1810_v20  ;;  %v903_v51 = vmul.f32 %v1193_v8, %v1806_v17 }
 0x159   : > { %v815_v45 = vadd.f32 %v1800_v14, %v799_v57  ;;  %v1178_v42 = vadd.f32 %v1162_v47, %v1126_v1  ;;  %v1074_v6 = vadd.f32 %v1058_v54, %v1022_v35  ;;  %v1163_v15 = vmul.f32 %v1818_v27, %v1143_v0  ;;  %v1144_v14 = vld [vmem:[#allocation2 + $0x128] sm:$0xff] }
 0x15a   : > { %v971_v49 = vadd.f32 %v955_v41, %v918_v3  ;;  %v1059_v16 = vmul.f32 %v1194_v50, %v1812_v21  ;;  %v956_v62 = vmul.f32 %v1091_v32, %v1808_v19  ;;  %v1215_v10 = vmul.f32 %v1823_v28, %v1195_v9 }
 0x15b   : > { %v867_v7 = vadd.f32 %v851_v58, %v815_v45  ;;  %v1230_v44 = vadd.f32 %v1214_v13, %v1178_v42  ;;  %v1127_v11 = vadd.f32 %v1111_v2, %v1074_v6  ;;  %v1112_v17 = vmul.f32 %v1814_v22, %v1092_v61 }
 0x15c   : > { %v1023_v18 = vadd.f32 %v1007_v5, %v971_v49  ;;  %v1008_v23 = vmul.f32 %v1143_v0, %v1810_v20  ;;  %v1164_v19 = vmul.f32 %v1818_v27, %v1144_v14  ;;  %v1060_v30 = vmul.f32 %v1195_v9, %v1812_v21 }
 0x15d   : > { %v919_v8 = vadd.f32 %v903_v51, %v867_v7  ;;  %1246 = vst.msk [vmem:[%s1694_s25 + $0x60] sm:$0xff] %vm475_vm0, %v1230_v44  ;;  %v1179_v4 = vadd.f32 %v1163_v15, %v1127_v11  ;;  %v1216_v33 = vmul.f32 %v1823_v28, %v1196_v25  ;;  %v1113_v20 = vmul.f32 %v1814_v22, %v1093_v59 }
 0x15e   : > { %v1075_v26 = vadd.f32 %v1059_v16, %v1023_v18  ;;  %v1165_v39 = vmul.f32 %v1818_v27, %v1145_v29  ;;  %v1217_v21 = vmul.f32 %v1823_v28, %v1197_v38 }
 0x15f   : > { %v972_v60 = vadd.f32 %v956_v62, %v919_v8  ;;  %v1231_v24 = vadd.f32 %v1215_v10, %v1179_v4 }
 0x160   : > { %v1128_v31 = vadd.f32 %v1112_v17, %v1075_v26 }
 0x161   : > { %v1024_v36 = vadd.f32 %v1008_v23, %v972_v60  ;;  %1247 = vst.msk [vmem:[%s1694_s25 + $0x68] sm:$0xff] %vm475_vm0, %v1231_v24 }
 0x162   : > { %v1180_v63 = vadd.f32 %v1164_v19, %v1128_v31 }
 0x163   : > { %v1076_v34 = vadd.f32 %v1060_v30, %v1024_v36 }
 0x164   : > { %v1232_v37 = vadd.f32 %v1216_v33, %v1180_v63 }
 0x165   : > { %v1129_v43 = vadd.f32 %v1113_v20, %v1076_v34 }
 0x166   : > { %1248 = vst.msk [vmem:[%s1694_s25 + $0x70] sm:$0xff] %vm475_vm0, %v1232_v37 }
 0x167   : > { %v1181_v46 = vadd.f32 %v1165_v39, %v1129_v43 }
 0x169   : > { %v1233_v12 = vadd.f32 %v1217_v21, %v1181_v46 }
 0x16b   : > { %1249 = vst.msk [vmem:[%s1694_s25 + $0x78] sm:$0xff] %vm475_vm0, %v1233_v12 }
 0x16c PF: > { %s17_s28 = sadd.s32 1, %s1598_s28   ;;  %s2044_s24 = smov %s1590_s26 }
 0x16d   : > { %p14_p12 = scmp.ge.s32.totalorder %s17_s28, 6   ;;  %s2045_s25 = smov %s1594_s27 }
 0x16e   : > { %s2046_s26 = smov %s2049_s29  ;;  %s2047_s27 = smov %s2053_s30 }
 0x16f   :  { %16 = sbr.rel (!%p14_p12) target bundleno = 3 (0x3), region = 95 }

</bundles_post_ra>
